<compile_context>
chip_gen: v5e
topology: v5e:2x2
jax: 0.10.0
libtpu: 0.0.40
codegen_flags: <defaults>
</compile_context>

<pallas_src>
import functools

import jax
import jax.numpy as jnp
from jax.experimental import pallas as pl
from jax.experimental.pallas import tpu as pltpu


def _cross_attn_kernel(q_ref, k_ref, v_ref, bias_ref,
                       wq_ref, wk_ref, wv_ref, wp_ref,
                       o_ref, *, scale, B, Nq, Nk, D):
    # Weights already in (in, out) layout -> plain x @ W (no transposes here).
    # Input projections over all B*N rows at once (best MXU sublane fill).
    qp = jnp.dot(q_ref[...], wq_ref[...],
                 preferred_element_type=jnp.float32) * scale   # (B*Nq, D)
    kp = jnp.dot(k_ref[...], wk_ref[...],
                 preferred_element_type=jnp.float32)           # (B*Nk, D)
    vp = jnp.dot(v_ref[...], wv_ref[...],
                 preferred_element_type=jnp.float32)           # (B*Nk, D)

    # Layout-preserving split of the row dim (Nq, Nk multiples of 8 for f32).
    qp = qp.reshape(B, Nq, D)
    kp = kp.reshape(B, Nk, D)
    vp = vp.reshape(B, Nk, D)

    # Scores: batched contraction over D; no explicit K transpose before the MXU.
    s = jnp.einsum('bqd,bkd->bqk', qp, kp,
                   preferred_element_type=jnp.float32)         # (B, Nq, Nk)
    s = s + bias_ref[...]          # (B, 1, Nk) additive mask bias, bcast over Nq

    # Numerically stable softmax over the key dim, f32 throughout.
    s = s - jnp.max(s, axis=-1, keepdims=True)
    p = jnp.exp(s)
    p = p * pl.reciprocal(jnp.sum(p, axis=-1, keepdims=True), approx=True)

    ctx = jnp.einsum('bqk,bkd->bqd', p, vp,
                     preferred_element_type=jnp.float32)       # (B, Nq, D)

    # Merge batch back into rows (layout-preserving) and project all rows at once.
    out = jnp.dot(ctx.reshape(B * Nq, D), wp_ref[...],
                  preferred_element_type=jnp.float32)          # (B*Nq, D)
    o_ref[...] = out.astype(o_ref.dtype)


def my_cross_attention(q, k, v, wq, wk, wv, wproj, supp_mask=None, qk_scale=None):
    """q: (B, Nq, D); k, v: (B, Nk, D); weights (out, in): (D, D); supp_mask: (B, Nk) bool."""
    B, Nq, D = q.shape
    Nk = k.shape[1]
    scale = float(qk_scale) if qk_scale is not None else D ** (-0.5)

    # Additive mask bias computed once in the wrapper: 0 where valid, -1e4 where masked.
    if supp_mask is None:
        bias = jnp.zeros((B, 1, Nk), dtype=jnp.float32)
    else:
        bias = ((1.0 - supp_mask.astype(jnp.float32)) * (-10000.0)).reshape(B, 1, Nk)

    # Fold batch into the row (sublane) dim: one kernel invocation handles all of B.
    q2 = q.reshape(B * Nq, D)
    k2 = k.reshape(B * Nk, D)
    v2 = v.reshape(B * Nk, D)

    # Pre-transpose weights once (PyTorch (out, in) -> (in, out)).
    wq_t, wk_t, wv_t, wp_t = wq.T, wk.T, wv.T, wproj.T

    kernel = functools.partial(_cross_attn_kernel,
                               scale=scale, B=B, Nq=Nq, Nk=Nk, D=D)

    def full(shape):
        zeros = (0,) * len(shape)
        return pl.BlockSpec(shape, lambda i, _z=zeros: _z)

    out2 = pl.pallas_call(
        kernel,
        out_shape=jax.ShapeDtypeStruct((B * Nq, D), q.dtype),
        grid_spec=pltpu.PrefetchScalarGridSpec(
            num_scalar_prefetch=0,
            grid=(1,),
            in_specs=[full((B * Nq, D)), full((B * Nk, D)), full((B * Nk, D)),
                      full((B, 1, Nk)),
                      full((D, D)), full((D, D)), full((D, D)), full((D, D))],
            out_specs=full((B * Nq, D)),
        ),
        compiler_params=pltpu.CompilerParams(
            dimension_semantics=("arbitrary",)),
    )(q2, k2, v2, bias, wq_t, wk_t, wv_t, wp_t)

    return out2.reshape(B, Nq, D)


def _reference(q, k, v, wq, wk, wv, wproj, supp_mask, scale):
    qp = q @ wq.T
    kp = k @ wk.T
    vp = v @ wv.T
    attn = jnp.einsum("bqd,bkd->bqk", qp, kp) * scale
    if supp_mask is not None:
        m = (1.0 - supp_mask.astype(jnp.float32))[:, None, :] * (-10000.0)
        attn = attn + m
    attn = jax.nn.softmax(attn, axis=-1)
    x = jnp.einsum("bqk,bkd->bqd", attn, vp)
    return x @ wproj.T


if __name__ == "__main__":
    B, Nq, Nk, D = 2, 8, 16, 32

    key = jax.random.PRNGKey(0)
    kq, kk, kv, kwq, kwk, kwv, kwp, kmask = jax.random.split(key, 8)

    q = jax.random.normal(kq, (B, Nq, D), dtype=jnp.float32)
    k = jax.random.normal(kk, (B, Nk, D), dtype=jnp.float32)
    v = jax.random.normal(kv, (B, Nk, D), dtype=jnp.float32)

    # Deterministic parameter init (PyTorch nn.Linear-style uniform bound).
    bound = 1.0 / (D ** 0.5)
    wq = jax.random.uniform(kwq, (D, D), jnp.float32, -bound, bound)
    wk = jax.random.uniform(kwk, (D, D), jnp.float32, -bound, bound)
    wv = jax.random.uniform(kwv, (D, D), jnp.float32, -bound, bound)
    wproj = jax.random.uniform(kwp, (D, D), jnp.float32, -bound, bound)

    supp_mask = jax.random.bernoulli(kmask, 0.7, (B, Nk))   # bool, True == keep
    supp_mask = supp_mask.at[:, 0].set(True)                # >=1 valid key per row

    out = my_cross_attention(q, k, v, wq, wk, wv, wproj, supp_mask=supp_mask)
    out = jax.block_until_ready(out)

    ref = _reference(q, k, v, wq, wk, wv, wproj, supp_mask, D ** (-0.5))
    assert out.shape == (B, Nq, D)
    # Tolerance loosened slightly vs. exact f32 to accommodate the approximate
    # (EUP vrcp) softmax reciprocal; any real bug is orders of magnitude larger.
    err = float(jnp.max(jnp.abs(out - ref)))
    assert jnp.allclose(out, ref, atol=2e-3, rtol=2e-3), err

    print("KERNEL_OK")
</pallas_src>

<mosaic_0001>
module attributes {stable_mosaic.version = 11 : i64} {
  func.func @_cross_attn_kernel(%arg0: i32, %arg1: memref<16x32xf32, #tpu.memory_space<vmem>>, %arg2: memref<32x32xf32, #tpu.memory_space<vmem>>, %arg3: memref<32x32xf32, #tpu.memory_space<vmem>>, %arg4: memref<2x1x16xf32, #tpu.memory_space<vmem>>, %arg5: memref<32x32xf32, #tpu.memory_space<vmem>>, %arg6: memref<32x32xf32, #tpu.memory_space<vmem>>, %arg7: memref<32x32xf32, #tpu.memory_space<vmem>>, %arg8: memref<32x32xf32, #tpu.memory_space<vmem>>, %arg9: memref<16x32xf32, #tpu.memory_space<vmem>>) attributes {dimension_semantics = [#tpu.dimension_semantics<arbitrary>], iteration_bounds = array<i64: 1>, scalar_prefetch = 0 : i64, scratch_operands = 0 : i64, tpu.core_type = #tpu.core_type<tc>, window_params = [{pipeline_mode = #tpu.pipeline_mode<synchronous>, transform_indices = @transform_0, window_bounds = array<i64: 16, 32>}, {pipeline_mode = #tpu.pipeline_mode<synchronous>, transform_indices = @transform_1, window_bounds = array<i64: 32, 32>}, {pipeline_mode = #tpu.pipeline_mode<synchronous>, transform_indices = @transform_2, window_bounds = array<i64: 32, 32>}, {pipeline_mode = #tpu.pipeline_mode<synchronous>, transform_indices = @transform_3, window_bounds = array<i64: 2, 1, 16>}, {pipeline_mode = #tpu.pipeline_mode<synchronous>, transform_indices = @transform_4, window_bounds = array<i64: 32, 32>}, {pipeline_mode = #tpu.pipeline_mode<synchronous>, transform_indices = @transform_5, window_bounds = array<i64: 32, 32>}, {pipeline_mode = #tpu.pipeline_mode<synchronous>, transform_indices = @transform_6, window_bounds = array<i64: 32, 32>}, {pipeline_mode = #tpu.pipeline_mode<synchronous>, transform_indices = @transform_7, window_bounds = array<i64: 32, 32>}, {pipeline_mode = #tpu.pipeline_mode<synchronous>, transform_indices = @transform_8, window_bounds = array<i64: 16, 32>}]} {
    %c0 = arith.constant 0 : index
    %c0_0 = arith.constant 0 : index
    %0 = vector.load %arg1[%c0, %c0_0] : memref<16x32xf32, #tpu.memory_space<vmem>>, vector<16x32xf32>
    %c0_1 = arith.constant 0 : index
    %c0_2 = arith.constant 0 : index
    %1 = vector.load %arg5[%c0_1, %c0_2] : memref<32x32xf32, #tpu.memory_space<vmem>>, vector<32x32xf32>
    %cst = arith.constant dense<0.000000e+00> : vector<16x32xf32>
    %2 = tpu.matmul %0, %1, %cst {dimension_numbers = #tpu.dot_dimension_numbers<[1], [0], [0], [1], [0, 0, 1, 1], [], []>} : vector<16x32xf32>, vector<32x32xf32>, vector<16x32xf32> -> vector<16x32xf32>
    %cst_3 = arith.constant 0.176776692 : f32
    %3 = vector.broadcast %cst_3 : f32 to vector<16x32xf32>
    %4 = arith.mulf %2, %3 : vector<16x32xf32>
    %c0_4 = arith.constant 0 : index
    %c0_5 = arith.constant 0 : index
    %5 = vector.load %arg2[%c0_4, %c0_5] : memref<32x32xf32, #tpu.memory_space<vmem>>, vector<32x32xf32>
    %c0_6 = arith.constant 0 : index
    %c0_7 = arith.constant 0 : index
    %6 = vector.load %arg6[%c0_6, %c0_7] : memref<32x32xf32, #tpu.memory_space<vmem>>, vector<32x32xf32>
    %cst_8 = arith.constant dense<0.000000e+00> : vector<32x32xf32>
    %7 = tpu.matmul %5, %6, %cst_8 {dimension_numbers = #tpu.dot_dimension_numbers<[1], [0], [0], [1], [0, 0, 1, 1], [], []>} : vector<32x32xf32>, vector<32x32xf32>, vector<32x32xf32> -> vector<32x32xf32>
    %c0_9 = arith.constant 0 : index
    %c0_10 = arith.constant 0 : index
    %8 = vector.load %arg3[%c0_9, %c0_10] : memref<32x32xf32, #tpu.memory_space<vmem>>, vector<32x32xf32>
    %c0_11 = arith.constant 0 : index
    %c0_12 = arith.constant 0 : index
    %9 = vector.load %arg7[%c0_11, %c0_12] : memref<32x32xf32, #tpu.memory_space<vmem>>, vector<32x32xf32>
    %cst_13 = arith.constant dense<0.000000e+00> : vector<32x32xf32>
    %10 = tpu.matmul %8, %9, %cst_13 {dimension_numbers = #tpu.dot_dimension_numbers<[1], [0], [0], [1], [0, 0, 1, 1], [], []>} : vector<32x32xf32>, vector<32x32xf32>, vector<32x32xf32> -> vector<32x32xf32>
    %11 = vector.shape_cast %4 : vector<16x32xf32> to vector<2x8x32xf32>
    %12 = vector.shape_cast %7 : vector<32x32xf32> to vector<2x16x32xf32>
    %13 = vector.shape_cast %10 : vector<32x32xf32> to vector<2x16x32xf32>
    "tpu.trace_start"() <{level = 10 : i32, message = "bqd,bkd->bqk"}> : () -> ()
    %cst_14 = arith.constant dense<0.000000e+00> : vector<2x8x16xf32>
    %14 = tpu.matmul %11, %12, %cst_14 {dimension_numbers = #tpu.dot_dimension_numbers<[2], [2], [1], [1], [0, 0, 0, 1, 1, 1], [0], [0]>} : vector<2x8x32xf32>, vector<2x16x32xf32>, vector<2x8x16xf32> -> vector<2x8x16xf32>
    "tpu.trace_stop"() : () -> ()
    %c0_15 = arith.constant 0 : index
    %c0_16 = arith.constant 0 : index
    %c0_17 = arith.constant 0 : index
    %15 = vector.load %arg4[%c0_15, %c0_16, %c0_17] : memref<2x1x16xf32, #tpu.memory_space<vmem>>, vector<2x1x16xf32>
    %16 = vector.broadcast %15 : vector<2x1x16xf32> to vector<2x8x16xf32>
    %17 = arith.addf %14, %16 : vector<2x8x16xf32>
    %cst_18 = arith.constant dense<0xFF800000> : vector<2x8xf32>
    %18 = vector.multi_reduction <maximumf>, %17, %cst_18 [2] : vector<2x8x16xf32> to vector<2x8xf32>
    %19 = vector.shape_cast %18 : vector<2x8xf32> to vector<2x8x1xf32>
    %20 = vector.broadcast %19 : vector<2x8x1xf32> to vector<2x8x16xf32>
    %21 = arith.subf %17, %20 : vector<2x8x16xf32>
    %22 = math.exp %21 : vector<2x8x16xf32>
    %cst_19 = arith.constant dense<0.000000e+00> : vector<2x8xf32>
    %23 = vector.multi_reduction <add>, %22, %cst_19 [2] : vector<2x8x16xf32> to vector<2x8xf32>
    %24 = vector.shape_cast %23 : vector<2x8xf32> to vector<2x8x1xf32>
    %25 = tpu.reciprocal %24 {approx = true} : vector<2x8x1xf32> -> vector<2x8x1xf32>
    %26 = vector.broadcast %25 : vector<2x8x1xf32> to vector<2x8x16xf32>
    %27 = arith.mulf %22, %26 : vector<2x8x16xf32>
    "tpu.trace_start"() <{level = 10 : i32, message = "bqk,bkd->bqd"}> : () -> ()
    %cst_20 = arith.constant dense<0.000000e+00> : vector<2x8x32xf32>
    %28 = tpu.matmul %27, %13, %cst_20 {dimension_numbers = #tpu.dot_dimension_numbers<[2], [1], [1], [2], [0, 0, 0, 1, 1, 2], [0], [0]>} : vector<2x8x16xf32>, vector<2x16x32xf32>, vector<2x8x32xf32> -> vector<2x8x32xf32>
    "tpu.trace_stop"() : () -> ()
    %29 = vector.shape_cast %28 : vector<2x8x32xf32> to vector<16x32xf32>
    %c0_21 = arith.constant 0 : index
    %c0_22 = arith.constant 0 : index
    %30 = vector.load %arg8[%c0_21, %c0_22] : memref<32x32xf32, #tpu.memory_space<vmem>>, vector<32x32xf32>
    %cst_23 = arith.constant dense<0.000000e+00> : vector<16x32xf32>
    %31 = tpu.matmul %29, %30, %cst_23 {dimension_numbers = #tpu.dot_dimension_numbers<[1], [0], [0], [1], [0, 0, 1, 1], [], []>} : vector<16x32xf32>, vector<32x32xf32>, vector<16x32xf32> -> vector<16x32xf32>
    %c0_24 = arith.constant 0 : index
    %c0_25 = arith.constant 0 : index
    %32 = vector.load %arg9[%c0_24, %c0_25] : memref<16x32xf32, #tpu.memory_space<vmem>>, vector<16x32xf32>
    tpu.vector_store %arg9[%c0_24, %c0_25], %31 {strides = array<i32>} : memref<16x32xf32, #tpu.memory_space<vmem>>, vector<16x32xf32>,
    return
  }
  func.func @transform_0(%arg0: i32) -> (i32, i32) {
    %c0_i32 = arith.constant 0 : i32
    %c0_i32_0 = arith.constant 0 : i32
    %c0_i32_1 = arith.constant 0 : i32
    return %c0_i32, %c0_i32_0 : i32, i32
  }
  func.func @transform_1(%arg0: i32) -> (i32, i32) {
    %c0_i32 = arith.constant 0 : i32
    %c0_i32_0 = arith.constant 0 : i32
    %c0_i32_1 = arith.constant 0 : i32
    return %c0_i32, %c0_i32_0 : i32, i32
  }
  func.func @transform_2(%arg0: i32) -> (i32, i32) {
    %c0_i32 = arith.constant 0 : i32
    %c0_i32_0 = arith.constant 0 : i32
    %c0_i32_1 = arith.constant 0 : i32
    return %c0_i32, %c0_i32_0 : i32, i32
  }
  func.func @transform_3(%arg0: i32) -> (i32, i32, i32) {
    %c0_i32 = arith.constant 0 : i32
    %c0_i32_0 = arith.constant 0 : i32
    %c0_i32_1 = arith.constant 0 : i32
    %c0_i32_2 = arith.constant 0 : i32
    return %c0_i32, %c0_i32_0, %c0_i32_1 : i32, i32, i32
  }
  func.func @transform_4(%arg0: i32) -> (i32, i32) {
    %c0_i32 = arith.constant 0 : i32
    %c0_i32_0 = arith.constant 0 : i32
    %c0_i32_1 = arith.constant 0 : i32
    return %c0_i32, %c0_i32_0 : i32, i32
  }
  func.func @transform_5(%arg0: i32) -> (i32, i32) {
    %c0_i32 = arith.constant 0 : i32
    %c0_i32_0 = arith.constant 0 : i32
    %c0_i32_1 = arith.constant 0 : i32
    return %c0_i32, %c0_i32_0 : i32, i32
  }
  func.func @transform_6(%arg0: i32) -> (i32, i32) {
    %c0_i32 = arith.constant 0 : i32
    %c0_i32_0 = arith.constant 0 : i32
    %c0_i32_1 = arith.constant 0 : i32
    return %c0_i32, %c0_i32_0 : i32, i32
  }
  func.func @transform_7(%arg0: i32) -> (i32, i32) {
    %c0_i32 = arith.constant 0 : i32
    %c0_i32_0 = arith.constant 0 : i32
    %c0_i32_1 = arith.constant 0 : i32
    return %c0_i32, %c0_i32_0 : i32, i32
  }
  func.func @transform_8(%arg0: i32) -> (i32, i32) {
    %c0_i32 = arith.constant 0 : i32
    %c0_i32_0 = arith.constant 0 : i32
    %c0_i32_1 = arith.constant 0 : i32
    return %c0_i32, %c0_i32_0 : i32, i32
  }
}

</mosaic_0001>

<bundles_post_ra>
// kernel: tpu_custom_call.1
= control target key start
LH: loop header
LB: loop body
LE: loop exit
PB: predicated region body
PF: predicated region fallthrough
CT: control target
= control target key end

     0   :  { %13 = vsyncpa [#allocation3], 0  ;;  %s848_s0 = inlined_call_operand.hbm [shape: f32[16,32], index: 0, kind: input, shape index: {}]   ;;  %s849_s1 = inlined_call_operand.hbm [shape: f32[32,32], index: 1, kind: input, shape index: {}]   ;;  %s850_s2 = inlined_call_operand.hbm [shape: f32[32,32], index: 2, kind: input, shape index: {}]   ;;  %s851_s3 = inlined_call_operand.vmem [shape: f32[2,1,16], index: 3, kind: input, shape index: {}]   ;;  %s852_s4 = inlined_call_operand.hbm [shape: f32[32,32], index: 4, kind: input, shape index: {}]   ;;  %s853_s5 = inlined_call_operand.hbm [shape: f32[32,32], index: 5, kind: input, shape index: {}]   ;;  %s854_s6 = inlined_call_operand.hbm [shape: f32[32,32], index: 6, kind: input, shape index: {}]   ;;  %s855_s7 = inlined_call_operand.hbm [shape: f32[32,32], index: 7, kind: input, shape index: {}]   ;;  %s856_s8 = inlined_call_operand.hbm [shape: f32[16,32], index: 8, kind: output, shape index: {}]  }
   0x1   :  { %14 = vsyncpa [#allocation6], 0 }
   0x2   :  { %15 = vsyncpa [#allocation9], 0 }
   0x3   :  { %16 = vsyncpa [#allocation12], 0 }
   0x4   :  { %17 = vsyncpa [#allocation4], 0  ;;  %s35_s29 = sshll.u32 %s849_s1, 4  ;;  %s713_s30 = smov [#allocation5]   ;;  %s36_s29 = int_to_ptr.hbm [resolvable:$true] %s35_s29 }
   0x5   :  { %s37_s9 = sshll.u32 %s713_s30, 4  ;;  %s63_s12 = sshll.u32 %s852_s4, 4  ;;  %s38_s9 = int_to_ptr.vmem [resolvable:$true] %s37_s9  ;;  %s64_s12 = int_to_ptr.hbm [resolvable:$true] %s63_s12 }
   0x6   :  { %s714_s13 = smov 128   ;;  %s715_s14 = smov 8  }
   0x7   :  { %43 = dma.hbm_to_vmem [thread:$0]  %s36_s29, 512, %s38_s9, [#allocation6], %s714_s13, %s714_s13, %s715_s14  }
   0x8   :  { %s716_s15 = smov [#allocation8]   ;;  %s89_s1 = sshll.u32 %s854_s6, 4  ;;  %s90_s1 = int_to_ptr.hbm [resolvable:$true] %s89_s1 }
   0x9   :  { %s65_s16 = sshll.u32 %s716_s15, 4  ;;  %s22_s20 = sshll.u32 %s848_s0, 4  ;;  %s66_s16 = int_to_ptr.vmem [resolvable:$true] %s65_s16  ;;  %s23_s20 = int_to_ptr.hbm [resolvable:$true] %s22_s20 }
   0xa   :  { %71 = dma.hbm_to_vmem [thread:$0]  %s64_s12, 512, %s66_s16, [#allocation9], %s714_s13, %s714_s13, %s715_s14  }
   0xb   :  { %s717_s21 = smov [#allocation11]   ;;  %s718_s23 = smov [#allocation2]  }
   0xc   :  { %s91_s22 = sshll.u32 %s717_s21, 4  ;;  %s24_s6 = sshll.u32 %s718_s23, 4  ;;  %s92_s22 = int_to_ptr.vmem [resolvable:$true] %s91_s22  ;;  %s25_s6 = int_to_ptr.vmem [resolvable:$true] %s24_s6 }
   0xd   :  { %97 = dma.hbm_to_vmem [thread:$0]  %s90_s1, 512, %s92_s22, [#allocation12], %s714_s13, %s714_s13, %s715_s14  }
   0xe   :  { %s48_s26 = sshll.u32 %s850_s2, 4  ;;  %s76_s28 = sshll.u32 %s853_s5, 4  ;;  %s49_s26 = int_to_ptr.hbm [resolvable:$true] %s48_s26  ;;  %s77_s28 = int_to_ptr.hbm [resolvable:$true] %s76_s28 }
   0xf   :  { %30 = dma.hbm_to_vmem [thread:$0]  %s23_s20, 256, %s25_s6, [#allocation3], %s714_s13, %s714_s13, %s715_s14  }
  0x10   :  { %s719_s29 = smov [#allocation7]   ;;  %s720_s9 = smov [#allocation10]  }
  0x11   :  { %s50_s30 = sshll.u32 %s719_s29, 4  ;;  %s78_s2 = sshll.u32 %s720_s9, 4  ;;  %s51_s30 = int_to_ptr.vmem [resolvable:$true] %s50_s30  ;;  %s79_s2 = int_to_ptr.vmem [resolvable:$true] %s78_s2 }
  0x12   :  { %56 = dma.hbm_to_vmem [thread:$0]  %s49_s26, 512, %s51_s30, [#allocation6], %s714_s13, %s714_s13, %s715_s14  }
  0x13   :  { %s102_s12 = sshll.u32 %s855_s7, 4  ;;  %s721_s5 = smov [#allocation13]   ;;  %s103_s12 = int_to_ptr.hbm [resolvable:$true] %s102_s12 }
  0x14   :  { %84 = dma.hbm_to_vmem [thread:$0]  %s77_s28, 512, %s79_s2, [#allocation9], %s714_s13, %s714_s13, %s715_s14  }
  0x15   :  { %s104_s15 = sshll.u32 %s721_s5, 4  ;;  %s105_s15 = int_to_ptr.vmem [resolvable:$true] %s104_s15 }
  0x16   :  { %110 = dma.hbm_to_vmem [thread:$0]  %s103_s12, 512, %s105_s15, [#allocation12], %s714_s13, %s714_s13, %s715_s14  }
  0x17   :  { %703 = dma.done.wait [#allocation3], 256  }
  0x18   :  { %704 = vsyncadd [#allocation3], 4294967040 }
  0x19   :  { %705 = dma.done.wait [#allocation6], 1024  }
  0x1a   :  { %706 = vsyncadd [#allocation6], 4294966272 }
  0x1b   :  { %707 = dma.done.wait [#allocation9], 1024  }
  0x1c   :  { %708 = vsyncadd [#allocation9], 4294966272 }
  0x1d   :  { %709 = dma.done.wait [#allocation12], 1024  }
  0x1e   :  { %710 = vsyncadd [#allocation12], 4294966272  ;;  %v184_v0 = vld [vmem:[#allocation10 + $0x18] sm:$0xff]  ;;  %v183_v1 = vld [vmem:[#allocation10 + $0x10] sm:$0xff]  ;;  %vm145_vm0 = vcmask 261120   ;;  %vm341_vm1 = vcmask 130048  }
  0x1f   :  { %209 = vmatpush.msra.mxu1 %v184_v0  ;;  %v144_v2 = vld [vmem:[#allocation8 + $0x18] sm:$0xff]  ;;  %v182_v3 = vld [vmem:[#allocation10 + $0x8] sm:$0xff]  ;;  %v143_v4 = vld [vmem:[#allocation8 + $0x10] sm:$0xff]  ;;  %s451_s20 = sshll.u32 %s856_s8, 4  ;;  %s452_s20 = int_to_ptr.hbm [resolvable:$true] %s451_s20 }
  0x20   :  { %164 = vmatpush.msra.mxu0 %v144_v2  ;;  %487 = vmatpush.msra.mxu3 %v144_v2  ;;  %v142_v5 = vld [vmem:[#allocation8 + $0x8] sm:$0xff]  ;;  %v181_v6 = vld [vmem:[#allocation10] sm:$0xff]  ;;  %v139_v9 = vld [vmem:[#allocation2] sm:$0xff] }
  0x21   :  { %210 = vmatpush.msra.mxu1 %v183_v1  ;;  %v177_v7 = vld [vmem:[#allocation5] sm:$0xff]  ;;  %v140_v10 = vld [vmem:[#allocation2 + $0x8] sm:$0xff]  ;;  %v178_v11 = vld [vmem:[#allocation5 + $0x8] sm:$0xff] }
  0x22   :  { %165 = vmatpush.msra.mxu0 %v143_v4  ;;  %488 = vmatpush.msra.mxu3 %v143_v4  ;;  %v141_v8 = vld [vmem:[#allocation8] sm:$0xff]  ;;  %v179_v12 = vld [vmem:[#allocation5 + $0x10] sm:$0xff]  ;;  %v180_v13 = vld [vmem:[#allocation5 + $0x18] sm:$0xff] }
  0x23   :  { %211 = vmatpush.msra.mxu1 %v182_v3  ;;  %v233_v22 = vld [vmem:[#allocation11 + $0x18] sm:$0xff]  ;;  %v232_v23 = vld [vmem:[#allocation11 + $0x10] sm:$0xff]  ;;  %v231_v24 = vld [vmem:[#allocation11 + $0x8] sm:$0xff] }
  0x24   :  { %166 = vmatpush.msra.mxu0 %v142_v5  ;;  %489 = vmatpush.msra.mxu3 %v142_v5  ;;  %v230_v25 = vld [vmem:[#allocation11] sm:$0xff]  ;;  %v501_v27 = vld [vmem:[%s851_s3] ss:$0 sm:$0xff]  ;;  %v227_v30 = vld [vmem:[#allocation7 + $0x8] sm:$0xff] }
  0x25   :  { %212 = vmatpush.msra.mxu1 %v181_v6  ;;  %258 = vmatpush.msra.mxu2 %v233_v22  ;;  %v226_v26 = vld [vmem:[#allocation7] sm:$0xff]  ;;  %v228_v32 = vld [vmem:[#allocation7 + $0x10] sm:$0xff]  ;;  %v229_v37 = vld [vmem:[#allocation7 + $0x18] sm:$0xff] }
  0x26   :  { %469 = vmatmul.msk.f32.vlgmr.msra.gmra.mxu1 %vm145_vm0, %v177_v7  ;;  %167 = vmatpush.msra.mxu0 %v141_v8  ;;  %v502_v33 = vld [vmem:[%s851_s3 + $0x1] ss:$0 sm:$0xff]  ;;  %v413_v52 = vld [vmem:[#allocation13 + $0x18] sm:$0xff]  ;;  %v411_v54 = vld [vmem:[#allocation13 + $0x8] sm:$0xff]  ;;  %s722_s3 = smov [#allocation14]  }
  0x27   :  { %467 = vmatmul.msk.f32.vlgmr.msra.gmra.mxu0 %vm145_vm0, %v139_v9  ;;  %490 = vmatpush.msra.mxu3 %v141_v8  ;;  %v412_v53 = vld [vmem:[#allocation13 + $0x10] sm:$0xff]  ;;  %v410_v61 = vld [vmem:[#allocation13] sm:$0xff]  ;;  %s449_s1 = sshll.u32 %s722_s3, 4  ;;  %s450_s1 = int_to_ptr.vmem [resolvable:$true] %s449_s1 }
  0x28   :  { %468 = vmatmul.msk.f32.vlgmr.msra.gmra.mxu3 %vm145_vm0, %v140_v10  ;;  %259 = vmatpush.msra.mxu2 %v232_v23 }
  0x2a   :  { %260 = vmatpush.msra.mxu2 %v231_v24 }
  0x2c   :  { %261 = vmatpush.msra.mxu2 %v230_v25 }
  0x2d   :  { %473 = vmatmul.msk.f32.vlgmr.msra.gmra.mxu2 %vm145_vm0, %v226_v26 }
  0x2e   :  { %470 = vmatmul.msk.f32.gmra.mxu1 %vm145_vm0, %v178_v11 }
  0x35   :  { %474 = vmatmul.msk.f32.gmra.mxu2 %vm145_vm0, %v227_v30 }
  0x36   :  { %471 = vmatmul.msk.f32.gmra.mxu1 %vm145_vm0, %v179_v12 }
  0x3d   :  { %475 = vmatmul.msk.f32.gmra.mxu2 %vm145_vm0, %v228_v32 }
  0x3e   :  { %472 = vmatmul.msk.f32.gmra.mxu1 %vm145_vm0, %v180_v13 }
  0x45   :  { %476 = vmatmul.msk.f32.gmra.mxu2 %vm145_vm0, %v229_v37 }
  0xa3   :  { %v214_v14 = vpop.f32.mrf.mxu1 }
  0xa4   :  { %v169_v16 = vpop.f32.mrf.mxu0 }
  0xa5   :  { %v175_v17 = vmul.f32 0.17677669, %v169_v16 }
  0xab   :  { %v217_v15 = vpop.f32.mrf.mxu1  ;;  %v172_v20 = vpop.f32.mrf.mxu3 }
  0xac   :  { %477 = vmatpush.xpose.msk.msrb.mxu3 %vm145_vm0, %v217_v15  ;;  %v176_v21 = vmul.f32 0.17677669, %v172_v20 }
  0xb0   :  { %478 = vmatpush.xpose.msk.msrb.mxu3 %vm145_vm0, %v214_v14  ;;  %v263_v41 = vpop.f32.mrf.mxu2 }
  0xb3   :  { %v220_v18 = vpop.f32.mrf.mxu1  ;;  %479 = vmatmul.msk.f32.vlgmr.msrb.gmra.mxu3 %vm145_vm0, %v175_v17 }
  0xb8   :  { %v266_v45 = vpop.f32.mrf.mxu2 }
  0xb9   :  { %381 = vmatpush.msrb.mxu0 %v266_v45 }
  0xbb   :  { %v223_v19 = vpop.f32.mrf.mxu1  ;;  %382 = vmatpush.msrb.mxu0 %v263_v41 }
  0xbc   :  { %480 = vmatpush.xpose.msk.msra.mxu3 %vm145_vm0, %v223_v19 }
  0xbd   :  { %432 = vmatpush.msra.mxu0 %v413_v52 }
  0xbf   :  { %433 = vmatpush.msra.mxu0 %v412_v53 }
  0xc0   :  { %481 = vmatpush.xpose.msk.msra.mxu3 %vm145_vm0, %v220_v18  ;;  %v269_v50 = vpop.f32.mrf.mxu2 }
  0xc1   :  { %434 = vmatpush.msra.mxu0 %v411_v54 }
  0xc3   :  { %482 = vmatmul.msk.f32.vlgmr.msra.gmra.mxu3 %vm145_vm0, %v176_v21  ;;  %435 = vmatpush.msra.mxu0 %v410_v61 }
  0xc8   :  { %v272_v51 = vpop.f32.mrf.mxu2 }
  0xc9   :  { %404 = vmatpush.msrb.mxu3 %v272_v51 }
  0xcb   :  { %405 = vmatpush.msrb.mxu3 %v269_v50 }
 0x136   :  { %v309_v28 = vpop.f32.mrf.mxu3 }
 0x137   :  { %v310_v29 = vadd.f32 %v501_v27, %v309_v28 }
 0x139   :  { %v342_v31 = vsel %vm341_vm1, %v310_v29, -inf }
 0x13a   :  { %343 = vmax.xlane.f32.xlu0 %v342_v31 }
 0x146   :  { %v338_v34 = vpop.f32.mrf.mxu3 }
 0x147   :  { %v339_v35 = vadd.f32 %v502_v33, %v338_v34 }
 0x149   :  { %v345_v36 = vsel %vm341_vm1, %v339_v35, -inf }
 0x14a   :  { %346 = vmax.xlane.f32.xlu0 %v345_v36 }
 0x1ad   :  { %v344_v38 = vpop.xlane.xlu0 %343 }
 0x1ae   :  { %v348_v39 = vsub.f32 %v310_v29, %v344_v38 }
 0x1b0   :  { %v350_v40 = vmul.f32 1.442695, %v348_v39 }
 0x1b2   :  { %503 = vpow2.f32 %v350_v40 }
 0x1b8   :  { %v504_v42 = vpop.eup %503 }
 0x1b9   :  { %v354_v43 = vsel %vm341_vm1, %v504_v42, 0.0 }
 0x1ba   :  { %355 = vadd.xlane.f32.xlu1 %v354_v43 }
 0x1bd   :  { %v347_v44 = vpop.xlane.xlu0 %346 }
 0x1be   :  { %v349_v46 = vsub.f32 %v339_v35, %v347_v44 }
 0x1c0   :  { %v352_v47 = vmul.f32 1.442695, %v349_v46 }
 0x1c2   :  { %505 = vpow2.f32 %v352_v47 }
 0x1c8   :  { %v506_v48 = vpop.eup %505 }
 0x1c9   :  { %v357_v49 = vsel %vm341_vm1, %v506_v48, 0.0 }
 0x1ca   :  { %358 = vadd.xlane.f32.xlu1 %v357_v49 }
 0x22d   :  { %v356_v55 = vpop.xlane.xlu1 %355 }
 0x22e   :  { %507 = vrcp.f32 %v356_v55 }
 0x234   :  { %v508_v56 = vpop.eup %507 }
 0x235   :  { %v362_v57 = vmul.f32 %v508_v56, %v504_v42 }
 0x237   :  { %483 = vmatmul.msk.f32.vlgmr.msrb.gmra.mxu0 %vm341_vm1, %v362_v57 }
 0x23d   :  { %v359_v58 = vpop.xlane.xlu1 %358 }
 0x23e   :  { %509 = vrcp.f32 %v359_v58 }
 0x244   :  { %v510_v59 = vpop.eup %509 }
 0x245   :  { %v363_v60 = vmul.f32 %v510_v59, %v506_v48 }
 0x247   :  { %484 = vmatmul.msk.f32.vlgmr.msrb.gmra.mxu3 %vm341_vm1, %v363_v60 }
 0x2b4   :  { %v384_v62 = vpop.f32.mrf.mxu0 }
 0x2b5   :  { %485 = vmatmul.msk.f32.vlgmr.msra.gmra.mxu0 %vm145_vm0, %v384_v62 }
 0x2ca   :  { %v407_v63 = vpop.f32.mrf.mxu3 }
 0x2cb   :  { %486 = vmatmul.msk.f32.gmra.mxu0 %vm145_vm0, %v407_v63 }
 0x332   :  { %v437_v0 = vpop.f32.mrf.mxu0 }
 0x333   :  { %443 = vst.msk [vmem:[#allocation14] sm:$0xff] %vm145_vm0, %v437_v0 }
 0x348   :  { %v440_v1 = vpop.f32.mrf.mxu0 }
 0x349   :  { %444 = vst.msk [vmem:[#allocation14 + $0x8] sm:$0xff] %vm145_vm0, %v440_v1 }
 0x34a   :  { %457 = dma.vmem_to_hbm [thread:$0]  %s450_s1, 256, %s452_s20, [#allocation4], %s714_s13, %s714_s13, %s715_s14  }
 0x34b   :  { %711 = dma.done.wait [#allocation4], 256  }
 0x34c   :  { %712 = vsyncadd [#allocation4], 4294967040 }
 0x34d   :  { %462 = vsyncpa [#allocation3], 1 }
 0x34e   :  { %463 = vsyncpa [#allocation6], 1 }
 0x34f   :  { %464 = vsyncpa [#allocation9], 1 }
 0x350   :  { %465 = vsyncpa [#allocation12], 1 }
 0x351   :  { %466 = vsyncpa [#allocation4], 1 }

</bundles_post_ra>
